<compile_context>
chip_gen: v7x
topology: tpu7x:2x2x1
jax: 0.10.0
libtpu: 0.0.40
codegen_flags: <defaults>
</compile_context>

<pallas_src>
import functools

import jax
import jax.numpy as jnp
from jax.experimental import pallas as pl
from jax.experimental.pallas import tpu as pltpu

LANE = 128
SUBLANE = 8

_FUSED_MAX_F32_BYTES = 4 * 1024 * 1024   # fused single-pass path up to 1M elements
_FUSED_VMEM_LIMIT = 40 * 1024 * 1024     # < 64 MiB (v7x physical), fine on v5e/v6e
_TILED_VMEM_LIMIT = 32 * 1024 * 1024


def _cdiv(a, b):
    return -(-a // b)


# ---------------------------------------------------------------------------
# Fused single-pass kernel: min/max + scalar delta/zero_point + quant-dequant.
# Whole (padded) tensor is one resident VMEM block; no grid.
# ---------------------------------------------------------------------------
def _fused_kernel(x_ref, o_ref, *, level, nb, pb, symmetric, always_zero):
    x = x_ref[...].astype(jnp.float32)
    x_min = jnp.minimum(jnp.min(x), 0.0)
    x_max = jnp.maximum(jnp.max(x), 0.0)
    delta = (x_max - x_min) / (level - 1)
    if symmetric:
        mabs = jnp.maximum(jnp.abs(x_min), x_max)
        x_min = -mabs
        delta = (2.0 * mabs) / (level - 2)
    if always_zero:
        delta = x_max / (level - 1)
    delta = jnp.where(delta < 1e-8, jnp.float32(1e-8), delta)
    if symmetric or always_zero:
        zp = jnp.float32(0.0)
    else:
        zp = jnp.round(-x_min / delta)
    # jnp.round matches torch.round (half-to-even); ste_round == round in fwd.
    x_q = jnp.clip(jnp.round(x / delta) + zp, nb, pb)
    o_ref[...] = (delta * (x_q - zp)).astype(o_ref.dtype)


# ---------------------------------------------------------------------------
# Pass 1 (large tensors): per-tile sublane min/max partials.
# Each grid step writes its own lane-dense (1,1,128) partial -> fully parallel.
# ---------------------------------------------------------------------------
def _minmax_partial_kernel(x_ref, min_ref, max_ref):
    x = x_ref[...].astype(jnp.float32)
    min_ref[...] = jnp.min(x, axis=0, keepdims=True).reshape(1, 1, LANE)
    max_ref[...] = jnp.max(x, axis=0, keepdims=True).reshape(1, 1, LANE)


# ---------------------------------------------------------------------------
# Pass 2 (large tensors): elementwise quantize-dequantize with SMEM scalars.
#   x_q  = clamp(round(x / delta) + zero_point, NB, PB)
#   x_dq = delta * (x_q - zero_point)
# ---------------------------------------------------------------------------
def _quant_dequant_kernel(delta_ref, zp_ref, x_ref, o_ref, *, nb, pb):
    delta = delta_ref[0, 0]
    zp = zp_ref[0, 0]
    x = x_ref[...].astype(jnp.float32)
    x_q = jnp.clip(jnp.round(x / delta) + zp, nb, pb)
    o_ref[...] = (delta * (x_q - zp)).astype(o_ref.dtype)


# ---------------------------------------------------------------------------
# Wrapper reproducing UniformAffineQuantizer.forward (first call: init + quant).
# ---------------------------------------------------------------------------
def uniform_affine_quantize(x, *, bits=8, symmetric=False, always_zero=False,
                            fused_max_bytes=_FUSED_MAX_F32_BYTES):
    # TODO(synk): channel_wise=True and MSE/KL/HIST/OMSE/LOGMINMAX scalers are
    # host-side init-time search heuristics (numpy histograms / grid search);
    # only the default MINMAX / channel_wise=False path is implemented here.
    level = 2 ** bits
    orig_shape = x.shape
    orig_dtype = x.dtype
    total = x.size

    if symmetric and not always_zero:
        nb, pb = float(-(level // 2)), float(level // 2 - 1)
    else:
        nb, pb = 0.0, float(level - 1)

    xf = x.reshape(-1)

    if total * 4 <= fused_max_bytes:
        # ---------------- fused single-pass path ----------------
        m_pad = _cdiv(total, LANE * SUBLANE) * SUBLANE
        pad = m_pad * LANE - total
        if pad:
            # zero padding is min/max-neutral: MINMAX clamps x_min<=0<=x_max anyway.
            xf = jnp.pad(xf, (0, pad))
        x2 = xf.reshape(m_pad, LANE)

        out2 = pl.pallas_call(
            functools.partial(_fused_kernel, level=level, nb=nb, pb=pb,
                              symmetric=symmetric, always_zero=always_zero),
            out_shape=jax.ShapeDtypeStruct((m_pad, LANE), orig_dtype),
            compiler_params=pltpu.CompilerParams(
                vmem_limit_bytes=_FUSED_VMEM_LIMIT),
        )(x2)
    else:
        # ---------------- two-pass tiled path ----------------
        m = _cdiv(total, LANE)
        tile_m = None
        if total % LANE == 0:
            for t in (2048, 1024, 512):       # 1 / 0.5 / 0.25 MiB f32 blocks
                if m % t == 0:
                    tile_m = t
                    break
        if tile_m is None:
            # ragged shape: bounded tile + min/max-neutral zero padding
            tile_m = 1024
            m = _cdiv(m, tile_m) * tile_m
        pad = m * LANE - total
        if pad:
            xf = jnp.pad(xf, (0, pad))
        x2 = xf.reshape(m, LANE)
        num_tiles = m // tile_m

        # Pass 1: per-tile min/max partials (parallel across grid / TCs).
        mins, maxs = pl.pallas_call(
            _minmax_partial_kernel,
            grid=(num_tiles,),
            in_specs=[pl.BlockSpec((tile_m, LANE), lambda i: (i, 0))],
            out_specs=[
                pl.BlockSpec((1, 1, LANE), lambda i: (i, 0, 0)),
                pl.BlockSpec((1, 1, LANE), lambda i: (i, 0, 0)),
            ],
            out_shape=[
                jax.ShapeDtypeStruct((num_tiles, 1, LANE), jnp.float32),
                jax.ShapeDtypeStruct((num_tiles, 1, LANE), jnp.float32),
            ],
            compiler_params=pltpu.CompilerParams(
                dimension_semantics=("parallel",),
                vmem_limit_bytes=_TILED_VMEM_LIMIT),
        )(x2)

        # Scalar glue: `minmax` scaler semantics (tiny, stays in JAX).
        x_min = jnp.minimum(jnp.min(mins), 0.0)
        x_max = jnp.maximum(jnp.max(maxs), 0.0)
        delta = (x_max - x_min) / (level - 1)
        if symmetric:
            mabs = jnp.maximum(jnp.abs(x_min), x_max)
            x_min = -mabs
            delta = (2.0 * mabs) / (level - 2)
        if always_zero:
            delta = x_max / (level - 1)
        delta = jnp.where(delta < 1e-8, jnp.float32(1e-8), delta)
        if symmetric or always_zero:
            zero_point = jnp.float32(0.0)
        else:
            zero_point = jnp.round(-x_min / delta)

        delta_arr = delta.reshape(1, 1).astype(jnp.float32)
        zp_arr = zero_point.reshape(1, 1).astype(jnp.float32)

        # Pass 2: elementwise quantize-dequantize (parallel across grid / TCs).
        out2 = pl.pallas_call(
            functools.partial(_quant_dequant_kernel, nb=nb, pb=pb),
            grid=(num_tiles,),
            in_specs=[
                pl.BlockSpec(memory_space=pltpu.MemorySpace.SMEM),  # delta (1,1)
                pl.BlockSpec(memory_space=pltpu.MemorySpace.SMEM),  # zero_point (1,1)
                pl.BlockSpec((tile_m, LANE), lambda i: (i, 0)),
            ],
            out_specs=pl.BlockSpec((tile_m, LANE), lambda i: (i, 0)),
            out_shape=jax.ShapeDtypeStruct((m, LANE), orig_dtype),
            compiler_params=pltpu.CompilerParams(
                dimension_semantics=("parallel",),
                vmem_limit_bytes=_TILED_VMEM_LIMIT),
        )(delta_arr, zp_arr, x2)

    return out2.reshape(-1)[:total].reshape(orig_shape)


# ---------------------------------------------------------------------------
# Pure-JAX reference (mirrors the torch code) for a correctness sanity check.
# ---------------------------------------------------------------------------
def _reference(x, *, bits=8):
    level = 2 ** bits
    xf = x.astype(jnp.float32)
    x_min = jnp.minimum(jnp.min(xf), 0.0)
    x_max = jnp.maximum(jnp.max(xf), 0.0)
    delta = (x_max - x_min) / (level - 1)
    delta = jnp.where(delta < 1e-8, jnp.float32(1e-8), delta)
    zp = jnp.round(-x_min / delta)
    x_q = jnp.clip(jnp.round(xf / delta) + zp, 0.0, float(level - 1))
    return (delta * (x_q - zp)).astype(x.dtype)


if __name__ == "__main__":
    key = jax.random.PRNGKey(0)

    # Primary example: NCHW conv activation, small shape -> fused single-pass path.
    x = jax.random.normal(key, (2, 4, 16, 16), dtype=jnp.float32)
    y = jax.block_until_ready(uniform_affine_quantize(x))
    y_ref = _reference(x)
    assert y.shape == x.shape and y.dtype == jnp.float32
    assert jnp.allclose(y, y_ref, atol=1e-6, rtol=1e-6), "fused path mismatch"

    # Secondary check: force the tiled two-pass path (parallel grid, partials reduce).
    x_big = jax.random.normal(jax.random.PRNGKey(1), (4, 32, 64, 64), dtype=jnp.float32)
    y_big = jax.block_until_ready(
        uniform_affine_quantize(x_big, fused_max_bytes=0))
    y_big_ref = _reference(x_big)
    assert y_big.shape == x_big.shape
    assert jnp.allclose(y_big, y_big_ref, atol=1e-6, rtol=1e-6), "tiled path mismatch"

    print("KERNEL_OK")
</pallas_src>

<mosaic_0001>
module attributes {stable_mosaic.version = 11 : i64} {
  func.func @_fused_kernel(%arg0: memref<16x128xf32, #tpu.memory_space<vmem>>, %arg1: memref<16x128xf32, #tpu.memory_space<vmem>>) attributes {dimension_semantics = [], scalar_prefetch = 0 : i64, scratch_operands = 0 : i64, tpu.core_type = #tpu.core_type<tc>} {
    %c0 = arith.constant 0 : index
    %c0_0 = arith.constant 0 : index
    %0 = vector.load %arg0[%c0, %c0_0] : memref<16x128xf32, #tpu.memory_space<vmem>>, vector<16x128xf32>
    %1 = vector.shape_cast %0 : vector<16x128xf32> to vector<1x16x128xf32>
    %cst = arith.constant dense<0x7F800000> : vector<1xf32>
    %2 = vector.multi_reduction <minimumf>, %1, %cst [1, 2] : vector<1x16x128xf32> to vector<1xf32>
    %3 = vector.shape_cast %2 : vector<1xf32> to vector<1x1x1xf32>
    %4 = vector.extract %3[0, 0, 0] : f32 from vector<1x1x1xf32>
    %cst_1 = arith.constant 0.000000e+00 : f32
    %5 = arith.minimumf %4, %cst_1 : f32
    %6 = vector.shape_cast %0 : vector<16x128xf32> to vector<1x16x128xf32>
    %cst_2 = arith.constant dense<0xFF800000> : vector<1xf32>
    %7 = vector.multi_reduction <maximumf>, %6, %cst_2 [1, 2] : vector<1x16x128xf32> to vector<1xf32>
    %8 = vector.shape_cast %7 : vector<1xf32> to vector<1x1x1xf32>
    %9 = vector.extract %8[0, 0, 0] : f32 from vector<1x1x1xf32>
    %cst_3 = arith.constant 0.000000e+00 : f32
    %10 = arith.maximumf %9, %cst_3 : f32
    %11 = arith.subf %10, %5 : f32
    %cst_4 = arith.constant 2.550000e+02 : f32
    %12 = arith.divf %11, %cst_4 : f32
    %cst_5 = arith.constant 9.99999993E-9 : f32
    %13 = arith.cmpf olt, %12, %cst_5 : f32
    %cst_6 = arith.constant 9.99999993E-9 : f32
    %14 = arith.select %13, %cst_6, %12 : f32
    %cst_7 = arith.constant 0.000000e+00 : f32
    %15 = arith.subf %cst_7, %5 : f32
    %16 = arith.divf %15, %14 : f32
    %17 = math.roundeven %16 : f32
    %18 = vector.broadcast %14 : f32 to vector<16x128xf32>
    %19 = arith.divf %0, %18 : vector<16x128xf32>
    %20 = math.roundeven %19 : vector<16x128xf32>
    %21 = vector.broadcast %17 : f32 to vector<16x128xf32>
    %22 = arith.addf %20, %21 : vector<16x128xf32>
    %cst_8 = arith.constant 0.000000e+00 : f32
    %cst_9 = arith.constant 2.550000e+02 : f32
    %23 = vector.broadcast %cst_8 : f32 to vector<16x128xf32>
    %24 = arith.maximumf %23, %22 : vector<16x128xf32>
    %25 = vector.broadcast %cst_9 : f32 to vector<16x128xf32>
    %26 = arith.minimumf %25, %24 : vector<16x128xf32>
    %27 = vector.broadcast %17 : f32 to vector<16x128xf32>
    %28 = arith.subf %26, %27 : vector<16x128xf32>
    %29 = vector.broadcast %14 : f32 to vector<16x128xf32>
    %30 = arith.mulf %29, %28 : vector<16x128xf32>
    %c0_10 = arith.constant 0 : index
    %c0_11 = arith.constant 0 : index
    %31 = vector.load %arg1[%c0_10, %c0_11] : memref<16x128xf32, #tpu.memory_space<vmem>>, vector<16x128xf32>
    tpu.vector_store %arg1[%c0_10, %c0_11], %30 {strides = array<i32>} : memref<16x128xf32, #tpu.memory_space<vmem>>, vector<16x128xf32>,
    return
  }
}

</mosaic_0001>

<bundles_post_ra>
// kernel: tpu_custom_call.1
= control target key start
LH: loop header
LB: loop body
LE: loop exit
PB: predicated region body
PF: predicated region fallthrough
CT: control target
= control target key end

     0   :  { %6 = vsyncpa [#allocation3], 0  ;;  %s210_s0 = inlined_call_operand.hbm [shape: f32[16,128], index: 0, kind: input, shape index: {}]   ;;  %s211_s1 = inlined_call_operand.hbm [shape: f32[16,128], index: 1, kind: output, shape index: {}]  }
   0x1   :  { %7 = vsyncpa [#allocation4], 0  ;;  %s165_s6 = smov [#allocation2]   ;;  %s117_s10 = scalar_lea.hbm %s210_s0, 256 }
   0x2   :  { %s13_s7 = sshll.u32 %s165_s6, 4  ;;  %p118_p0 = scmp.ne.s32.totalorder %s210_s0, %s117_s10  ;;  %s14_s7 = int_to_ptr.vmem [resolvable:$true] %s13_s7 }
   0x3   :  { %p121_p1 = scmp.lt.u32.totalorder %s117_s10, %s210_s0 }
   0x5   :  { %p123_p2 = pnand %p121_p1, %p118_p0 }
   0x7   :  { %126 = shalt.err (!%p123_p2)
}
   0x8   :  { %s127_s15 = scalar_lea.vmem %s14_s7, 256  ;;  %p132_p4 = scmp.lt.s32.totalorder %s14_s7, %s14_s7 }
   0x9   :  { %p128_p3 = scmp.ne.s32.totalorder %s14_s7, %s127_s15  ;;  %p133_p5 = scmp.lt.s32.totalorder %s127_s15, %s127_s15 }
   0xb   :  { %p134_p6 = por %p133_p5, %p132_p4 }
   0xd   :  { %p135_p7 = pnand %p134_p6, %p128_p3 }
   0xf   :  { %138 = shalt.err (!%p135_p7)
}
  0x10   :  { %s166_s16 = smov 128   ;;  %s167_s17 = smov 8  }
  0x11   :  { %19 = dma.hbm_to_vmem [thread:$0]  %s210_s0, 256, %s14_s7, [#allocation3], %s166_s16, %s166_s16, %s167_s17  }
  0x12   :  { %161 = dma.done.wait [#allocation3], 256  }
  0x13   :  { %162 = vsyncadd [#allocation3], 4294967040  ;;  %v23_v0 = vld [vmem:[#allocation2] sm:$0xff]  ;;  %v24_v1 = vld [vmem:[#allocation2 + $0x8] sm:$0xff]  ;;  %s168_s21 = smov 0.0   ;;  %s169_s6 = smov [#allocation5]  }
  0x14   :  { %v25_v2 = vmin.f32 %v23_v0, %v24_v1  ;;  %v36_v3 = vmax.f32 %v23_v0, %v24_v1  ;;  %s90_s7 = sshll.u32 %s169_s6, 4  ;;  %s91_s7 = int_to_ptr.vmem [resolvable:$true] %s90_s7 }
  0x15   :  { %s139_s8 = scalar_lea.vmem %s91_s7, 256  ;;  %p144_p11 = scmp.lt.s32.totalorder %s91_s7, %s91_s7 }
  0x16   :  { %26 = vmin.xlane.f32.xlu0 %v25_v2  ;;  %p140_p10 = scmp.ne.s32.totalorder %s91_s7, %s139_s8  ;;  %p145_p12 = scmp.lt.s32.totalorder %s139_s8, %s139_s8 }
  0x18   :  { %p146_p13 = por %p145_p12, %p144_p11 }
  0x1a   :  { %37 = vmax.xlane.f32.xlu0 %v36_v3  ;;  %p147_p0 = pnand %p146_p13, %p140_p10 }
  0xa3   :  { %v27_v4 = vpop.xlane.xlu0 %26 }
  0xa4   :  { %v28_v5 = vrot.slane %v27_v4, 4 }
  0xa6   :  { %v29_v6 = vmin.f32 %v27_v4, %v28_v5 }
  0xa7   :  { %v38_v7 = vpop.xlane.xlu0 %37 }
  0xa8   :  { %v30_v8 = vrot.slane %v29_v6, 2  ;;  %v39_v9 = vrot.slane %v38_v7, 4 }
  0xaa   :  { %v40_v10 = vmax.f32 %v38_v7, %v39_v9  ;;  %v31_v11 = vmin.f32 %v29_v6, %v30_v8 }
  0xac   :  { %v41_v12 = vrot.slane %v40_v10, 2  ;;  %v32_v13 = vrot.slane %v31_v11, 1 }
  0xae   :  { %v42_v14 = vmax.f32 %v40_v10, %v41_v12  ;;  %v33_v15 = vmin.f32 %v31_v11, %v32_v13 }
  0xb0   :  { %102 = vpush %v33_v15  ;;  %v43_v16 = vrot.slane %v42_v14, 1 }
  0xb2   :  { %v44_v17 = vmax.f32 %v42_v14, %v43_v16 }
  0xb4   :  { %104 = vpush %v44_v17 }
  0xe1   :  { %s103_s0 = spop %102 }
  0xe2   :  { %s35_s22 = smin.f32 %s168_s21, %s103_s0 }
  0xe3   :  { %s53_s26 = ssub.f32 0.0, %s35_s22 }
  0xe5   :  { %s105_s20 = spop %104 }
  0xe6   :  { %s46_s23 = smax.f32 %s168_s21, %s105_s20 }
  0xe7   :  { %s47_s24 = ssub.f32 %s46_s23, %s35_s22 }
  0xe9   :  { %s50_s25 = smul.f32 0.003921569, %s47_s24 }
  0xeb   :  { %p51_p8 = scmp.lt.f32.partialorder %s50_s25, 1e-08 }
  0xed   :  { %s213_s25 = smov (%p51_p8, %s50_s25), 1e-08 }
  0xee   :  { %v54_v18 = vstv %s213_s25 }
  0xef   :  { %115 = vrcp.f32 %v54_v18 }
  0xf9   :  { %v116_v19 = vpop.eup %115 }
  0xfa   :  { %106 = vpush %v116_v19  ;;  %v68_v20 = vmul.f32 %v116_v19, %v23_v0  ;;  %v69_v21 = vmul.f32 %v116_v19, %v24_v1 }
  0xfc   :  { %v108_v22 = vround.rtne.f32 %v68_v20  ;;  %v109_v23 = vround.rtne.f32 %v69_v21 }
 0x12b   :  { %s107_s27 = spop %106 }
 0x12c   :  { %s57_s28 = smul.f32 %s107_s27, %s53_s26 }
 0x12e   :  { %s58_s29 = scvt.f32.s32 %s57_s28  ;;  %s63_s30 = sand.u32 2147483647, %s57_s28 }
 0x12f   :  { %s61_s3 = sand.u32 2147483648, %s57_s28  ;;  %p64_p9 = scmp.lt.f32.partialorder %s63_s30, 2.1474836e+09 }
 0x130   :  { %s59_s2 = scvt.s32.f32 %s58_s29 }
 0x132   :  { %s60_s4 = sand.u32 2147483647, %s59_s2 }
 0x133   :  { %s62_s5 = sor.u32 %s61_s3, %s60_s4 }
 0x134   :  { %s215_s5 = smov (!%p64_p9, %s62_s5), %s57_s28 }
 0x135   :  { %v72_v24 = vstv %s215_s5 }
 0x136   :  { %v73_v25 = vadd.f32 %v108_v22, %v72_v24  ;;  %v74_v26 = vadd.f32 %v109_v23, %v72_v24 }
 0x138   :  { %v75_v27 = vmax.f32 %v73_v25, 0.0  ;;  %v76_v28 = vmax.f32 %v74_v26, 0.0 }
 0x13a   :  { %v77_v29 = vmin.f32 %v75_v27, 255.0  ;;  %v78_v30 = vmin.f32 %v76_v28, 255.0 }
 0x13c   :  { %v79_v31 = vsub.f32 %v77_v29, %v72_v24  ;;  %v80_v32 = vsub.f32 %v78_v30, %v72_v24 }
 0x13e   :  { %v81_v33 = vmul.f32 %v79_v31, %v54_v18  ;;  %v82_v34 = vmul.f32 %v80_v32, %v54_v18 }
 0x140   :  { %83 = vst [vmem:[#allocation5] sm:$0xff] %v81_v33  ;;  %84 = vst [vmem:[#allocation5 + $0x8] sm:$0xff] %v82_v34 }
 0x141   :  { %150 = shalt.err (!%p147_p0)
}
 0x142   :  { %s151_s11 = scalar_lea.hbm %s211_s1, 256 }
 0x143   :  { %p152_p1 = scmp.ne.s32.totalorder %s211_s1, %s151_s11  ;;  %p155_p2 = scmp.lt.u32.totalorder %s151_s11, %s211_s1 }
 0x145   :  { %p157_p3 = pnand %p155_p2, %p152_p1 }
 0x147   :  { %160 = shalt.err (!%p157_p3)
}
 0x148   :  { %96 = dma.vmem_to_hbm [thread:$0]  %s91_s7, 256, %s211_s1, [#allocation4], %s166_s16, %s166_s16, %s167_s17  }
 0x149   :  { %163 = dma.done.wait [#allocation4], 256  }
 0x14a   :  { %164 = vsyncadd [#allocation4], 4294967040 }
 0x14b   :  { %100 = vsyncpa [#allocation3], 1 }
 0x14c   :  { %101 = vsyncpa [#allocation4], 1 }

</bundles_post_ra>
